<compile_context>
chip_gen: v5e
topology: v5e:2x2
jax: 0.10.0
libtpu: 0.0.40
codegen_flags: <defaults>
</compile_context>

<pallas_src>
import functools

import numpy as np
import jax
import jax.numpy as jnp
from jax import lax
from jax.experimental import pallas as pl
from jax.experimental.pallas import tpu as pltpu

LN_EPS = 1e-5


# --------------------------------------------------------------------------- #
# Kernels
# --------------------------------------------------------------------------- #
def _ln_affine_f32(y, g, b):
    """Row-wise (last-axis) LayerNorm with the affine fused into the rsqrt scale.

    Two-pass (centered) variance is kept deliberately: it is robust to
    large-mean activations and the extra VMEM pass hides under the HBM DMA.
    """
    mean = jnp.mean(y, axis=-1, keepdims=True)
    centered = y - mean
    var = jnp.mean(centered * centered, axis=-1, keepdims=True)
    return centered * (g * lax.rsqrt(var + LN_EPS)) + b


def _residual_ln_kernel(x_ref, y_ref, g_ref, b_ref, o_ref):
    """o = x + gamma * LN(y) + beta, on (tile_rows, H) tiles."""
    # TODO(synk): dropout_p > 0 (training mode) not implemented; p=0.0 => identity.
    normed = _ln_affine_f32(y_ref[...].astype(jnp.float32), g_ref[...], b_ref[...])
    o_ref[...] = (x_ref[...].astype(jnp.float32) + normed).astype(o_ref.dtype)


def _ln_only_kernel(y_ref, g_ref, b_ref, o_ref):
    """o = gamma * LN(y) + beta  (x is None path: no residual HBM stream)."""
    o_ref[...] = _ln_affine_f32(y_ref[...].astype(jnp.float32),
                                g_ref[...], b_ref[...]).astype(o_ref.dtype)


def _bcast_residual_ln_kernel(r_ref, y_ref, g_ref, b_ref, o_ref):
    """o[b, s, :] = r[b, 0, :] + gamma * LN(y[b, s, :]) + beta."""
    normed = _ln_affine_f32(y_ref[...].astype(jnp.float32), g_ref[...], b_ref[...])
    o_ref[...] = (r_ref[...].astype(jnp.float32) + normed).astype(o_ref.dtype)


# --------------------------------------------------------------------------- #
# Tiling helpers
# --------------------------------------------------------------------------- #
def _round_up(n, m):
    return ((n + m - 1) // m) * m


def _sublane_multiple(*dtypes):
    """Dtype-native sublane multiple: 8 for 4-byte, 16 for 2-byte, 32 for 1-byte."""
    min_bytes = min(int(np.dtype(d).itemsize) for d in dtypes)
    return max(8, 8 * (4 // max(min_bytes, 1)))


def _vmem_capacity_bytes():
    try:
        info = pltpu.get_tpu_info()
        cap = getattr(info, "vmem_capacity_bytes", None)
        if cap:
            return int(cap)
    except Exception:
        pass
    try:
        kind = jax.devices()[0].device_kind.lower()
        if "v7" in kind:
            return 64 << 20           # v7x: 64 MiB per TensorCore
        return 128 << 20              # v5e / v6e: 128 MiB
    except Exception:
        pass
    return 64 << 20                   # conservative fallback


def _vmem_limit(vmem):
    return int(max(32 << 20, min(vmem * 3 // 4, 128 << 20)))


def _choose_row_tile(rows, hidden, stream_itemsizes, sublane):
    """Largest sublane-multiple row tile whose double-buffered streams plus ~3
    full-width f32 temporaries fit well inside VMEM, capped so the grid keeps a
    few steps (v7x megacore occupancy + pipeline overlap)."""
    vmem = _vmem_capacity_bytes()
    per_row = 2 * sum(int(s) for s in stream_itemsizes) * hidden + 3 * 4 * hidden
    tile = (vmem // 2) // max(per_row, 1)
    tile = max(sublane, min(2048, (tile // sublane) * sublane))
    if rows > sublane:
        target_steps = 4 if rows >= 4 * sublane else 2
        tile = min(tile, _round_up(pl.cdiv(rows, target_steps), sublane))
    else:
        tile = rows                   # single full block (full-dim block is always legal)
    return int(tile), _vmem_limit(vmem)


def _choose_bcast_tiles(B, S, H, stream_itemsizes, sublane):
    """Pick (tile_b, tile_s) for the broadcast-residual path from the VMEM budget."""
    vmem = _vmem_capacity_bytes()
    per_row = 2 * sum(int(s) for s in stream_itemsizes) * H + 3 * 4 * H
    max_rows = max(1, (vmem // 2) // max(per_row, 1))
    if max_rows >= S:
        tile_s = S                                    # full seq extent (always legal)
        tile_b = max(1, min(B, max_rows // max(S, 1)))
        if B > 1:                                     # keep >= 2 grid steps for megacore
            tile_b = min(tile_b, pl.cdiv(B, 2))
    else:
        tile_b = 1
        if S > sublane:
            tile_s = max(sublane, (max_rows // sublane) * sublane)
            tile_s = min(tile_s, _round_up(pl.cdiv(S, 2), sublane))
        else:
            tile_s = S
    return int(tile_b), int(tile_s), _vmem_limit(vmem)


# --------------------------------------------------------------------------- #
# pallas_call launchers
# --------------------------------------------------------------------------- #
@functools.partial(jax.jit, static_argnames=("tile_rows", "vmem_limit", "out_dtype"))
def _run_residual_ln(x2d, y2d, g, b, *, tile_rows, vmem_limit, out_dtype):
    rows, hidden = x2d.shape
    row_spec = pl.BlockSpec((tile_rows, hidden), lambda i: (i, 0))
    vec_spec = pl.BlockSpec((1, hidden), lambda i: (0, 0))
    return pl.pallas_call(
        _residual_ln_kernel,
        out_shape=jax.ShapeDtypeStruct((rows, hidden), out_dtype),
        grid_spec=pltpu.PrefetchScalarGridSpec(
            num_scalar_prefetch=0,
            grid=(pl.cdiv(rows, tile_rows),),
            in_specs=[row_spec, row_spec, vec_spec, vec_spec],
            out_specs=row_spec,
        ),
        compiler_params=pltpu.CompilerParams(
            dimension_semantics=("parallel",),
            vmem_limit_bytes=vmem_limit),
    )(x2d, y2d, g, b)


@functools.partial(jax.jit, static_argnames=("tile_rows", "vmem_limit", "out_dtype"))
def _run_ln_only(y2d, g, b, *, tile_rows, vmem_limit, out_dtype):
    rows, hidden = y2d.shape
    row_spec = pl.BlockSpec((tile_rows, hidden), lambda i: (i, 0))
    vec_spec = pl.BlockSpec((1, hidden), lambda i: (0, 0))
    return pl.pallas_call(
        _ln_only_kernel,
        out_shape=jax.ShapeDtypeStruct((rows, hidden), out_dtype),
        grid_spec=pltpu.PrefetchScalarGridSpec(
            num_scalar_prefetch=0,
            grid=(pl.cdiv(rows, tile_rows),),
            in_specs=[row_spec, vec_spec, vec_spec],
            out_specs=row_spec,
        ),
        compiler_params=pltpu.CompilerParams(
            dimension_semantics=("parallel",),
            vmem_limit_bytes=vmem_limit),
    )(y2d, g, b)


@functools.partial(jax.jit,
                   static_argnames=("tile_b", "tile_s", "vmem_limit", "out_dtype"))
def _run_bcast_residual_ln(r3d, y3d, g3, b3, *, tile_b, tile_s, vmem_limit, out_dtype):
    B, S, H = y3d.shape
    seq_spec = pl.BlockSpec((tile_b, tile_s, H), lambda bi, si: (bi, si, 0))
    # 2-D residual row, broadcast over the seq grid axis via the index_map
    # (no materialized jnp.repeat / extra (B,S,H) HBM stream).
    res_spec = pl.BlockSpec((tile_b, 1, H), lambda bi, si: (bi, 0, 0))
    vec_spec = pl.BlockSpec((1, 1, H), lambda bi, si: (0, 0, 0))
    return pl.pallas_call(
        _bcast_residual_ln_kernel,
        out_shape=jax.ShapeDtypeStruct((B, S, H), out_dtype),
        grid_spec=pltpu.PrefetchScalarGridSpec(
            num_scalar_prefetch=0,
            grid=(pl.cdiv(B, tile_b), pl.cdiv(S, tile_s)),
            in_specs=[res_spec, seq_spec, vec_spec, vec_spec],
            out_specs=seq_spec,
        ),
        compiler_params=pltpu.CompilerParams(
            dimension_semantics=("parallel", "parallel"),
            vmem_limit_bytes=vmem_limit),
    )(r3d, y3d, g3, b3)


# --------------------------------------------------------------------------- #
# Public wrapper (matches SublayerConnection.forward with dropout_p = 0)
# --------------------------------------------------------------------------- #
def sublayer_connection(x, output, gamma, beta):
    """JAX/Pallas equivalent of SublayerConnection.forward (dropout_p = 0)."""
    hidden = gamma.shape[-1]
    g = gamma.reshape(1, hidden).astype(jnp.float32)
    b = beta.reshape(1, hidden).astype(jnp.float32)

    if x is None:
        lead = output.shape[:-1]
        y2d = output.reshape(-1, hidden)
        rows = y2d.shape[0]
        sub = _sublane_multiple(output.dtype)
        tile, vmem_limit = _choose_row_tile(
            rows, hidden, (output.dtype.itemsize, output.dtype.itemsize), sub)
        out = _run_ln_only(y2d, g, b, tile_rows=tile, vmem_limit=vmem_limit,
                           out_dtype=output.dtype)
        return out.reshape(*lead, hidden)

    if x.ndim == output.ndim:
        out_dtype = jnp.result_type(x.dtype, output.dtype)
        lead = x.shape[:-1]
        x2d = x.reshape(-1, hidden)
        y2d = output.reshape(-1, hidden)
        rows = x2d.shape[0]
        sub = _sublane_multiple(x.dtype, output.dtype, out_dtype)
        itemsizes = (x.dtype.itemsize, output.dtype.itemsize,
                     np.dtype(out_dtype).itemsize)
        tile, vmem_limit = _choose_row_tile(rows, hidden, itemsizes, sub)
        out = _run_residual_ln(x2d, y2d, g, b, tile_rows=tile,
                               vmem_limit=vmem_limit, out_dtype=out_dtype)
        return out.reshape(*lead, hidden)

    # Rank mismatch: the rank-2 tensor is the residual (broadcast over seq),
    # LayerNorm is applied to the rank-3 tensor.
    #   x.ndim < output.ndim -> repeat(x)      + LN(output)
    #   x.ndim > output.ndim -> repeat(output) + LN(x)
    if x.ndim < output.ndim:
        residual2d, normed3d = x, output
    else:
        residual2d, normed3d = output, x
    out_dtype = jnp.result_type(x.dtype, output.dtype)
    B, S, H = normed3d.shape
    sub = _sublane_multiple(normed3d.dtype, out_dtype)
    itemsizes = (normed3d.dtype.itemsize, np.dtype(out_dtype).itemsize)
    tile_b, tile_s, vmem_limit = _choose_bcast_tiles(B, S, H, itemsizes, sub)
    return _run_bcast_residual_ln(
        residual2d.reshape(B, 1, H), normed3d,
        g.reshape(1, 1, hidden), b.reshape(1, 1, hidden),
        tile_b=tile_b, tile_s=tile_s, vmem_limit=vmem_limit, out_dtype=out_dtype)


# --------------------------------------------------------------------------- #
# Pure-JAX reference + self-test
# --------------------------------------------------------------------------- #
def _reference(x, output, gamma, beta):
    def ln(y):
        y = y.astype(jnp.float32)
        mean = jnp.mean(y, axis=-1, keepdims=True)
        var = jnp.mean((y - mean) ** 2, axis=-1, keepdims=True)
        return (y - mean) / jnp.sqrt(var + LN_EPS) * gamma + beta

    if x is None:
        return ln(output)
    if x.ndim < output.ndim:
        return jnp.repeat(x[:, None, :], output.shape[1], axis=1) + ln(output)
    if x.ndim > output.ndim:
        return jnp.repeat(output[:, None, :], x.shape[1], axis=1) + ln(x)
    return x + ln(output)


if __name__ == "__main__":
    key = jax.random.PRNGKey(0)
    batch, seq, hidden = 2, 8, 128  # lane-dense hidden (multiple of 128)

    kx, ko, kg, kb, kx2 = jax.random.split(key, 5)
    x3 = jax.random.normal(kx, (batch, seq, hidden), dtype=jnp.float32)
    y3 = jax.random.normal(ko, (batch, seq, hidden), dtype=jnp.float32)
    x2 = jax.random.normal(kx2, (batch, hidden), dtype=jnp.float32)

    gamma = 1.0 + 0.01 * jax.random.normal(kg, (hidden,), dtype=jnp.float32)
    beta = 0.01 * jax.random.normal(kb, (hidden,), dtype=jnp.float32)

    # 1) equal-rank residual path (hot path)
    out_eq = jax.block_until_ready(sublayer_connection(x3, y3, gamma, beta))
    assert out_eq.shape == x3.shape
    assert jnp.allclose(out_eq, _reference(x3, y3, gamma, beta), atol=1e-5, rtol=1e-5)

    # 2) rank-mismatch paths (residual broadcast via BlockSpec, batch+seq tiled)
    out_bc = jax.block_until_ready(sublayer_connection(x2, y3, gamma, beta))
    assert out_bc.shape == y3.shape
    assert jnp.allclose(out_bc, _reference(x2, y3, gamma, beta), atol=1e-5, rtol=1e-5)

    out_bc2 = jax.block_until_ready(sublayer_connection(x3, x2, gamma, beta))
    assert out_bc2.shape == x3.shape
    assert jnp.allclose(out_bc2, _reference(x3, x2, gamma, beta), atol=1e-5, rtol=1e-5)

    # 3) x is None path (pure LayerNorm, no residual HBM stream)
    out_none = jax.block_until_ready(sublayer_connection(None, y3, gamma, beta))
    assert jnp.allclose(out_none, _reference(None, y3, gamma, beta), atol=1e-5, rtol=1e-5)

    # 4) ragged row / batch counts -> cdiv grids with masked boundary blocks (no pad/slice)
    kr1, kr2, kr3 = jax.random.split(kx, 3)
    xr = jax.random.normal(kr1, (3, 5, hidden), dtype=jnp.float32)
    yr = jax.random.normal(kr2, (3, 5, hidden), dtype=jnp.float32)
    xr2 = jax.random.normal(kr3, (3, hidden), dtype=jnp.float32)
    out_r = jax.block_until_ready(sublayer_connection(xr, yr, gamma, beta))
    assert jnp.allclose(out_r, _reference(xr, yr, gamma, beta), atol=1e-5, rtol=1e-5)
    out_rb = jax.block_until_ready(sublayer_connection(xr2, yr, gamma, beta))
    assert jnp.allclose(out_rb, _reference(xr2, yr, gamma, beta), atol=1e-5, rtol=1e-5)

    # 5) bf16 activations (dtype-aware sublane multiple / stream sizing)
    x3b = x3.astype(jnp.bfloat16)
    y3b = y3.astype(jnp.bfloat16)
    out_bf = jax.block_until_ready(sublayer_connection(x3b, y3b, gamma, beta))
    ref_bf = _reference(x3b.astype(jnp.float32), y3b.astype(jnp.float32), gamma, beta)
    assert out_bf.dtype == jnp.bfloat16
    assert jnp.allclose(out_bf.astype(jnp.float32), ref_bf, atol=5e-2, rtol=5e-2)

    print("KERNEL_OK")
</pallas_src>

<mosaic_0001>
module attributes {stable_mosaic.version = 11 : i64} {
  func.func @_residual_ln_kernel(%arg0: i32, %arg1: memref<8x128xf32, #tpu.memory_space<vmem>>, %arg2: memref<8x128xf32, #tpu.memory_space<vmem>>, %arg3: memref<1x128xf32, #tpu.memory_space<vmem>>, %arg4: memref<1x128xf32, #tpu.memory_space<vmem>>, %arg5: memref<8x128xf32, #tpu.memory_space<vmem>>) attributes {dimension_semantics = [#tpu.dimension_semantics<parallel>], iteration_bounds = array<i64: 2>, scalar_prefetch = 0 : i64, scratch_operands = 0 : i64, tpu.core_type = #tpu.core_type<tc>, window_params = [{transform_indices = @transform_0, window_bounds = array<i64: 8, 128>}, {transform_indices = @transform_1, window_bounds = array<i64: 8, 128>}, {pipeline_mode = #tpu.pipeline_mode<synchronous>, transform_indices = @transform_2, window_bounds = array<i64: 1, 128>}, {pipeline_mode = #tpu.pipeline_mode<synchronous>, transform_indices = @transform_3, window_bounds = array<i64: 1, 128>}, {transform_indices = @transform_4, window_bounds = array<i64: 8, 128>}]} {
    %c0 = arith.constant 0 : index
    %c0_0 = arith.constant 0 : index
    %0 = vector.load %arg2[%c0, %c0_0] : memref<8x128xf32, #tpu.memory_space<vmem>>, vector<8x128xf32>
    %c0_1 = arith.constant 0 : index
    %c0_2 = arith.constant 0 : index
    %1 = vector.load %arg3[%c0_1, %c0_2] : memref<1x128xf32, #tpu.memory_space<vmem>>, vector<1x128xf32>
    %c0_3 = arith.constant 0 : index
    %c0_4 = arith.constant 0 : index
    %2 = vector.load %arg4[%c0_3, %c0_4] : memref<1x128xf32, #tpu.memory_space<vmem>>, vector<1x128xf32>
    %cst = arith.constant dense<0.000000e+00> : vector<8xf32>
    %3 = vector.multi_reduction <add>, %0, %cst [1] : vector<8x128xf32> to vector<8xf32>
    %4 = vector.shape_cast %3 : vector<8xf32> to vector<8x1xf32>
    %cst_5 = arith.constant 1.280000e+02 : f32
    %5 = vector.broadcast %cst_5 : f32 to vector<8x1xf32>
    %6 = arith.divf %4, %5 : vector<8x1xf32>
    %7 = vector.broadcast %6 : vector<8x1xf32> to vector<8x128xf32>
    %8 = arith.subf %0, %7 : vector<8x128xf32>
    %9 = arith.mulf %8, %8 : vector<8x128xf32>
    %cst_6 = arith.constant dense<0.000000e+00> : vector<8xf32>
    %10 = vector.multi_reduction <add>, %9, %cst_6 [1] : vector<8x128xf32> to vector<8xf32>
    %11 = vector.shape_cast %10 : vector<8xf32> to vector<8x1xf32>
    %cst_7 = arith.constant 1.280000e+02 : f32
    %12 = vector.broadcast %cst_7 : f32 to vector<8x1xf32>
    %13 = arith.divf %11, %12 : vector<8x1xf32>
    %cst_8 = arith.constant 9.99999974E-6 : f32
    %14 = vector.broadcast %cst_8 : f32 to vector<8x1xf32>
    %15 = arith.addf %13, %14 : vector<8x1xf32>
    %16 = math.rsqrt %15 : vector<8x1xf32>
    %17 = vector.broadcast %1 : vector<1x128xf32> to vector<8x128xf32>
    %18 = vector.broadcast %16 : vector<8x1xf32> to vector<8x128xf32>
    %19 = arith.mulf %17, %18 : vector<8x128xf32>
    %20 = arith.mulf %8, %19 : vector<8x128xf32>
    %21 = vector.broadcast %2 : vector<1x128xf32> to vector<8x128xf32>
    %22 = arith.addf %20, %21 : vector<8x128xf32>
    %c0_9 = arith.constant 0 : index
    %c0_10 = arith.constant 0 : index
    %23 = vector.load %arg1[%c0_9, %c0_10] : memref<8x128xf32, #tpu.memory_space<vmem>>, vector<8x128xf32>
    %24 = arith.addf %23, %22 : vector<8x128xf32>
    %c0_11 = arith.constant 0 : index
    %c0_12 = arith.constant 0 : index
    %25 = vector.load %arg5[%c0_11, %c0_12] : memref<8x128xf32, #tpu.memory_space<vmem>>, vector<8x128xf32>
    tpu.vector_store %arg5[%c0_11, %c0_12], %24 {strides = array<i32>} : memref<8x128xf32, #tpu.memory_space<vmem>>, vector<8x128xf32>,
    return
  }
  func.func @transform_0(%arg0: i32) -> (i32, i32) {
    %c0_i32 = arith.constant 0 : i32
    %c0_i32_0 = arith.constant 0 : i32
    return %arg0, %c0_i32 : i32, i32
  }
  func.func @transform_1(%arg0: i32) -> (i32, i32) {
    %c0_i32 = arith.constant 0 : i32
    %c0_i32_0 = arith.constant 0 : i32
    return %arg0, %c0_i32 : i32, i32
  }
  func.func @transform_2(%arg0: i32) -> (i32, i32) {
    %c0_i32 = arith.constant 0 : i32
    %c0_i32_0 = arith.constant 0 : i32
    %c0_i32_1 = arith.constant 0 : i32
    return %c0_i32, %c0_i32_0 : i32, i32
  }
  func.func @transform_3(%arg0: i32) -> (i32, i32) {
    %c0_i32 = arith.constant 0 : i32
    %c0_i32_0 = arith.constant 0 : i32
    %c0_i32_1 = arith.constant 0 : i32
    return %c0_i32, %c0_i32_0 : i32, i32
  }
  func.func @transform_4(%arg0: i32) -> (i32, i32) {
    %c0_i32 = arith.constant 0 : i32
    %c0_i32_0 = arith.constant 0 : i32
    return %arg0, %c0_i32 : i32, i32
  }
}

</mosaic_0001>

<bundles_post_ra>
// kernel: _run_residual_ln.1
= control target key start
LH: loop header
LB: loop body
LE: loop exit
PB: predicated region body
PF: predicated region fallthrough
CT: control target
= control target key end

     0   :  { %s808_s0 = inlined_call_operand.hbm [shape: f32[16,128], index: 0, kind: input, shape index: {}]   ;;  %s809_s1 = inlined_call_operand.hbm [shape: f32[16,128], index: 1, kind: input, shape index: {}]   ;;  %s810_s2 = inlined_call_operand.vmem [shape: f32[1,128], index: 2, kind: input, shape index: {}]   ;;  %s811_s3 = inlined_call_operand.vmem [shape: f32[1,128], index: 3, kind: input, shape index: {}]   ;;  %s812_s4 = inlined_call_operand.hbm [shape: f32[16,128], index: 4, kind: output, shape index: {}]  }
   0x1   :  { %813 = sst [smem:[#allocation11_spill]] %s808_s0 }
   0x2   :  { %9 = vsyncpa [#allocation3], 0 }
   0x3   :  { %11 = vsyncpa [#allocation3 + $0x1], 0 }
   0x4   :  { %12 = vsyncpa [#allocation6], 0 }
   0x5   :  { %14 = vsyncpa [#allocation6 + $0x1], 0 }
   0x6   :  { %15 = vsyncpa [#allocation4], 0 }
   0x7   :  { %17 = vsyncpa [#allocation4 + $0x1], 0  ;;  %s635_s15 = smov 0   ;;  %s637_s16 = smov 0  }
   0x8   :  { %s639_s17 = smov 0   ;;  %s641_s18 = smov 0  }
   0x9 LB: > { %s656_s19 = sadd.s32 4294967295, %s607_s18   ;;  %s404_s20 = sadd.s32 4294967294, %s607_s18   ;;  %s607_s18 = sphi %s641_s18, %s825_s18   ;;  %s603_s17 = sphi %s639_s17, %s824_s17   ;;  %s599_s16 = sphi %s637_s16, %s823_s16   ;;  %s595_s15 = sphi %s635_s15, %s822_s15  }
   0xa   : > { %s660_s21 = sadd.s32 1, %s607_s18   ;;  %s30_s22 = sadd.s32 1, %s603_s17 }
   0xb   : > { %s27_s23 = ssub.s32 %s607_s18, %s660_s21  ;;  %p37_p0 = scmp.ne.s32.totalorder %s603_s17, %s599_s16 }
   0xc   : > { %p28_p1 = scmp.eq.s32.totalorder %s27_s23, 0  ;;  %p38_p2 = scmp.eq.s32.totalorder %s607_s18, 0 }
   0xd   : > { %p43_p3 = scmp.ne.s32.totalorder %s599_s16, %s595_s15  ;;  %p44_p4 = scmp.eq.s32.totalorder %s656_s19, 0 }
   0xe   : > { %s672_s24 = scalar_select %p28_p1, %s603_s17, %s30_s22  }
   0xf   : > { %p674_p5 = por %p38_p2, %p37_p0  ;;  %p678_p6 = por %p44_p4, %p43_p3 }
  0x10   : > { %p135_p7 = scmp.eq.s32.totalorder %s656_s19, 1  ;;  %p141_p8 = scmp.eq.s32.totalorder %s404_s20, 1 }
  0x11   : > { %p436_p10 = scmp.lt.s32.totalorder %s607_s18, 2  ;;  %s694_s29 = sand.u32 1, %s603_s17  }
  0x12   : > { %p685_p11 = por %p135_p7, %p37_p0  ;;  %p689_p12 = por %p141_p8, %p43_p3 }
  0x13   : > { %s408_s30 = sshll.u32 %s607_s18, 3  ;;  %s407_s5 = sshll.u32 %s694_s29, 3 }
  0x14   : > { %s818_s0 = sld [smem:[#allocation11_spill]]  ;;  %s171_s10 = scalar_lea.vmem [#allocation2], %s407_s5 }
  0x15   : > { %s179_s11 = sshll.u32 %s171_s10, 4  ;;  %p703_p13 = pnand %p436_p10, %p674_p5  ;;  %s180_s11 = int_to_ptr.vmem [resolvable:$true] %s179_s11 }
  0x16   : > { %p411_p0 = scmp.ge.s32.totalorder %s607_s18, 1  ;;  %p203_p1 = scmp.lt.s32.totalorder %s607_s18, 3 }
  0x17   : > { %s168_s13 = scalar_lea.sflag [#allocation3], %s694_s29  ;;  %p481_p3 = pneg %p703_p13 }
  0x1a   : > { %s175_s8 = scalar_lea.hbm %s818_s0, %s408_s30  ;;  %s484_s25 = scalar_lea.hbm %s818_s0, 16 }
  0x1b   : > { %s177_s9 = sshll.u32 %s175_s8, 4  ;;  %s178_s9 = int_to_ptr.hbm [resolvable:$true] %s177_s9 }
  0x1c   : > { %s477_s14 = sshra.s32 %s178_s9, 4  ;;  %s478_s14 = int_to_ptr.hbm [resolvable:$true] %s477_s14 }
  0x1d   : > { %s479_s20 = scalar_lea.hbm %s478_s14, 8  ;;  %p485_p5 = scmp.lt.s32.totalorder %s478_s14, %s818_s0 }
  0x1e   : > { %p480_p2 = scmp.ne.s32.totalorder %s478_s14, %s479_s20  ;;  %p486_p8 = scmp.lt.s32.totalorder %s484_s25, %s479_s20 }
  0x20   : > { %p482_p4 = pnand %p481_p3, %p480_p2  ;;  %p487_p10 = por %p486_p8, %p485_p5 }
  0x22   : > { %p483_p7 = pneg %p482_p4 }
  0x24   : > { %p488_p9 = pnand %p487_p10, %p483_p7 }
  0x26   : > { %491 = shalt.err (!%p488_p9)
}
  0x27   : > { %428 = dma.hbm_to_vmem [thread:$0]  (!%p703_p13), %s178_s9, 128, %s180_s11, %s168_s13  }
  0x28   : > { %p727_p2 = pnand %p411_p0, %p203_p1  ;;  %s194_s14 = scalar_lea.hbm %s809_s1, %s408_s30 }
  0x29   : > { %s196_s20 = sshll.u32 %s194_s14, 4  ;;  %s190_s23 = scalar_lea.vmem [#allocation5], %s407_s5  ;;  %s197_s20 = int_to_ptr.hbm [resolvable:$true] %s196_s20 }
  0x2a   : > { %s198_s25 = sshll.u32 %s190_s23, 4  ;;  %s187_s6 = scalar_lea.sflag [#allocation6], %s694_s29  ;;  %s199_s25 = int_to_ptr.vmem [resolvable:$true] %s198_s25 }
  0x2b   : > { %s507_s7 = sshra.s32 %s197_s20, 4  ;;  %s514_s13 = scalar_lea.hbm %s809_s1, 16  ;;  %s508_s7 = int_to_ptr.hbm [resolvable:$true] %s507_s7 }
  0x2c   : > { %s509_s0 = scalar_lea.hbm %s508_s7, 8  ;;  %p515_p4 = scmp.lt.s32.totalorder %s508_s7, %s809_s1 }
  0x2d   : > { %p510_p9 = scmp.ne.s32.totalorder %s508_s7, %s509_s0  ;;  %p516_p7 = scmp.lt.s32.totalorder %s514_s13, %s509_s0 }
  0x2f   : > { %p512_p0 = pnand %p510_p9, %p481_p3  ;;  %p517_p5 = por %p516_p7, %p515_p4 }
  0x31   : > { %p513_p1 = pneg %p512_p0 }
  0x33   : > { %p518_p8 = pnand %p517_p5, %p513_p1 }
  0x35   : > { %521 = shalt.err (!%p518_p8)
}
  0x36   : > { %431 = dma.hbm_to_vmem [thread:$0]  (!%p703_p13), %s197_s20, 128, %s199_s25, %s187_s6  }
  0x37   : > { %207 = sbr.rel (%p727_p2) target bundleno = 335 (0x14f), region = 36  ;;  %s749_s29 = sand.u32 (!%p727_p2), 1, %s599_s16  }
  0x38   : > { %s752_s5 = sshll.u32 (!%p727_p2), %s749_s29, 3  ;;  %s210_s22 = scalar_lea.sflag (!%p727_p2), [#allocation3], %s749_s29 }
  0x39   : > { %s213_s0 = scalar_lea.vmem (!%p727_p2), [#allocation2], %s752_s5 }
  0x3c   : > { %582 = dma.done.wait (%p678_p6), %s210_s22, 128  }
  0x3d   : > { %584 = vsyncadd (%p678_p6), %s210_s22, 4294967168  ;;  %s220_s12 = scalar_lea.sflag [#allocation6], %s749_s29  ;;  %s223_s8 = scalar_lea.vmem [#allocation5], %s752_s5 }
  0x3e   : > { %586 = dma.done.wait (%p678_p6), %s220_s12, 128  }
  0x3f   : > { %588 = vsyncadd (%p678_p6), %s220_s12, 4294967168  ;;  %v254_v0 = vld [vmem:[%s223_s8] sm:$0xff]  ;;  %v609_v1 = vmov 128.0   ;;  %v471_v20 = vld [vmem:[%s810_s2] ss:$0 sm:$0xff]  ;;  %s416_s20 = sshll.u32 %s656_s19, 3 }
  0x40   : > { %257 = vadd.xlane.f32.xlu0 %v254_v0  ;;  %473 = vrcp.f32 %v609_v1  ;;  %v472_v24 = vld [vmem:[%s811_s3] ss:$0 sm:$0xff]  ;;  %s306_s9 = scalar_lea.hbm %s812_s4, %s416_s20  ;;  %s253_s11 = scalar_lea.vmem [#allocation7], %s752_s5 }
  0x41   : > { %v292_v26 = vld [vmem:[%s213_s0] sm:$0xff]  ;;  %s308_s13 = sshll.u32 %s253_s11, 4  ;;  %s310_s10 = sshll.u32 %s306_s9, 4  ;;  %s309_s13 = int_to_ptr.vmem [resolvable:$true] %s308_s13  ;;  %s311_s10 = int_to_ptr.hbm [resolvable:$true] %s310_s10 }
  0x42   : > { %s296_s19 = scalar_lea.sflag [#allocation4], %s749_s29  ;;  %s551_s30 = sshra.s32 %s311_s10, 4  ;;  %s552_s30 = int_to_ptr.hbm [resolvable:$true] %s551_s30 }
  0x43   : > { %s553_s22 = scalar_lea.hbm %s552_s30, 8  ;;  %s557_s0 = scalar_lea.hbm %s812_s4, 16 }
  0x44   : > { %p554_p6 = scmp.ne.s32.totalorder %s552_s30, %s553_s22  ;;  %p558_p10 = scmp.lt.s32.totalorder %s552_s30, %s812_s4 }
  0x45   : > { %p559_p2 = scmp.lt.s32.totalorder %s557_s0, %s553_s22 }
  0x46   : > { %v474_v2 = vpop.eup %473  ;;  %p555_p13 = pnand %p554_p6, %p685_p11 }
  0x47   : > { %v260_v3 = vmul.f32 128.0, %v474_v2  ;;  %vm264_vm0 = vweird.f32 %v474_v2  ;;  %p560_p9 = por %p559_p2, %p558_p10 }
  0x48   : > { %p556_p3 = pneg %p555_p13 }
  0x49   : > { %v261_v4 = vsub.f32 1.0, %v260_v3 }
  0x4a   : > { %p561_p0 = pnand %p560_p9, %p556_p3 }
  0x4b   : > { %v262_v5 = vmul.f32 %v474_v2, %v261_v4 }
  0x4d   : > { %v263_v6 = vadd.f32 %v474_v2, %v262_v5 }
  0x4f   : > { %v265_v7 = vsel %vm264_vm0, %v474_v2, %v263_v6 }
  0xb3   : > { %v258_v8 = vpop.xlane.xlu0 %257 }
  0xb4   : > { %v266_v9 = vmul.f32 %v265_v7, %v258_v8 }
  0xb6   : > { %v267_v10 = vsub.f32 %v254_v0, %v266_v9 }
  0xb8   : > { %v268_v11 = vmul.f32 %v267_v10, %v267_v10 }
  0xba   : > { %269 = vadd.xlane.f32.xlu0 %v268_v11 }
 0x12d   : > { %v270_v12 = vpop.xlane.xlu0 %269 }
 0x12e   : > { %v271_v13 = vmul.f32 %v270_v12, %v265_v7 }
 0x130   : > { %v272_v14 = vadd.f32 1e-05, %v271_v13 }
 0x132   : > { %475 = vrsqrt.f32 %v272_v14  ;;  %vm279_vm2 = vweird.f32 %v272_v14 }
 0x138   : > { %v476_v15 = vpop.eup %475 }
 0x139   : > { %v274_v16 = vmul.f32 %v476_v15, %v272_v14  ;;  %vm280_vm1 = vweird.f32 %v476_v15 }
 0x13a   : > { %vm281_vm3 = vmor %vm279_vm2, %vm280_vm1 }
 0x13b   : > { %v275_v17 = vmul.f32 %v476_v15, %v274_v16 }
 0x13d   : > { %v276_v18 = vmul.f32 0.5, %v275_v17 }
 0x13f   : > { %v277_v19 = vsub.f32 1.5, %v276_v18 }
 0x141   : > { %v278_v21 = vmul.f32 %v476_v15, %v277_v19 }
 0x143   : > { %v282_v22 = vsel %vm281_vm3, %v476_v15, %v278_v21 }
 0x144   : > { %v286_v23 = vmul.f32 %v471_v20, %v282_v22 }
 0x146   : > { %v287_v25 = vmul.f32 %v286_v23, %v267_v10 }
 0x148   : > { %v291_v27 = vadd.f32 %v472_v24, %v287_v25 }
 0x14a   : > { %v293_v28 = vadd.f32 %v292_v26, %v291_v27 }
 0x14c   : > { %294 = vst [vmem:[%s253_s11] sm:$0xff] %v293_v28 }
 0x14d   : > { %564 = shalt.err (!%p561_p0)
}
 0x14e   : > { %423 = dma.vmem_to_hbm [thread:$0]  (%p685_p11), %s309_s13, 128, %s311_s10, %s296_s19  }
 0x14f PF: > { %s322_s29 = sand.u32 1, %s595_s15   ;;  %p821_p1 = scmp.ge.s32.totalorder %s607_s18, 2 }
 0x150   : > { %s323_s14 = scalar_lea.sflag [#allocation4], %s322_s29 }
 0x151   : > { %p433_p4 = pnand %p821_p1, %p689_p12 }
 0x153   : > { %p434_p7 = pneg %p433_p4 }
 0x155   : > { %590 = dma.done.wait (%p434_p7), %s323_s14, 128  }
 0x156   : > { %592 = vsyncadd (%p434_p7), %s323_s14, 4294967168  ;;  %p20_p5 = scmp.ge.s32.totalorder %s660_s21, 4   ;;  %s822_s15 = smov %s599_s16 }
 0x157   : > { %s823_s16 = smov %s603_s17  ;;  %s824_s17 = smov %s672_s24 }
 0x158   : > { %s825_s18 = smov %s660_s21  ;;  %22 = sbr.rel (!%p20_p5) target bundleno = 9 (0x9), region = 94 }
 0x15d   :  { %329 = vsyncpa [#allocation3], 1 }
 0x15e   :  { %331 = vsyncpa [#allocation3 + $0x1], 1 }
 0x15f   :  { %332 = vsyncpa [#allocation6], 1 }
 0x160   :  { %334 = vsyncpa [#allocation6 + $0x1], 1 }
 0x161   :  { %335 = vsyncpa [#allocation4], 1 }
 0x162   :  { %337 = vsyncpa [#allocation4 + $0x1], 1 }

</bundles_post_ra>
